<compile_context>
chip_gen: v5e
topology: v5e:2x2
jax: 0.10.0
libtpu: 0.0.40
codegen_flags: <defaults>
</compile_context>

<pallas_src>
import functools

import jax
import jax.numpy as jnp
from jax import lax
from jax.experimental import pallas as pl
from jax.experimental.pallas import tpu as pltpu

_LANE = 128


def _round_up(x, m):
    return ((x + m - 1) // m) * m


def _vmem_budget_bytes():
    """Generation-aware VMEM budget with headroom for pipelining/compiler."""
    try:
        cap = int(pltpu.get_tpu_info().vmem_capacity_bytes)
    except Exception:
        cap = 64 * 1024 * 1024          # conservative fallback (v7x per-core)
    return max(16 * 1024 * 1024, min(int(cap * 0.55), 96 * 1024 * 1024))


# --------------------------------------------------------------------------
# Pass 1: per-batch x2-side pipeline  ->  wrct = Wr @ (head_mask * context^T)
# --------------------------------------------------------------------------
def _context_kernel(x2_ref, wkv_ref, bkv_ref, wr_ref, cmask_ref, wrct_ref, *,
                    key_channels):
    """One grid step == one batch element.

    x2    : (1, C2, L2)           (full extent, no padding needed)
    wkv   : (K+V, C2)   bkv : (K+V, 1)   (fused key/value 1x1-conv weights)
    wr    : (C2, V)
    cmask : (V, K)  1.0 where (value channel, key channel) share a head
    wrct  : (1, C2, K)  output, float32
    """
    x2 = x2_ref[0]                                           # (C2, L2)
    kv = jnp.dot(wkv_ref[...], x2,
                 preferred_element_type=jnp.float32) + bkv_ref[...]  # (K+V, L2)
    keys = kv[:key_channels, :]                              # (K, L2) f32
    values = kv[key_channels:, :]                            # (V, L2) f32

    # Key softmax over the spatial (lane) axis — row independent, all heads.
    km = jnp.max(keys, axis=1, keepdims=True)
    ke = jnp.exp(keys - km)
    keys_sm = ke * pl.reciprocal(jnp.sum(ke, axis=1, keepdims=True),
                                 approx=False)               # exact; per-batch only

    # All heads' context^T at once: ct[v, k] = sum_l values[v,l] * keys_sm[k,l],
    # masked to the block-diagonal (same-head) entries.
    ct = lax.dot_general(values, keys_sm, (((1,), (1,)), ((), ())),
                         preferred_element_type=jnp.float32)  # (V, K)
    wrct = jnp.dot(wr_ref[...].astype(jnp.float32), ct * cmask_ref[...],
                   preferred_element_type=jnp.float32)        # (C2, K)
    wrct_ref[0] = wrct


# --------------------------------------------------------------------------
# Pass 2: per-(batch, L1 tile) query projection + softmax + output matmul
# --------------------------------------------------------------------------
def _attend_kernel(x1_ref, wrct_ref, wq_ref, bq_ref, br_ref, out_ref, *,
                   head_count, head_key_channels):
    """x1: (1, C1, TL1); wrct: (1, C2, K); out: (1, C2, TL1)."""
    x1 = x1_ref[0]                                           # (C1, TL1)
    queries = jnp.dot(wq_ref[...], x1,
                      preferred_element_type=jnp.float32) + bq_ref[...]  # (K, TL1)
    wrct = wrct_ref[0]                                       # (C2, K) f32

    hk = head_key_channels
    acc = None
    for h in range(head_count):                              # small static loop
        qh = queries[h * hk:(h + 1) * hk, :]                 # (hk, TL1)
        # Per-head max stabilizer -> matches the reference per-head softmax.
        mh = jnp.max(qh, axis=0, keepdims=True)
        eh = jnp.exp(qh - mh)
        ph = eh * pl.reciprocal(jnp.sum(eh, axis=0, keepdims=True), approx=True)
        contrib = jnp.dot(wrct[:, h * hk:(h + 1) * hk], ph,
                          preferred_element_type=jnp.float32)  # (C2, TL1)
        acc = contrib if acc is None else acc + contrib

    out_ref[0] = (acc + br_ref[...]).astype(out_ref.dtype)


# --------------------------------------------------------------------------
# Wrapper
# --------------------------------------------------------------------------
def efficient_cross_attention(x1, x2, params, *, key_channels, value_channels,
                              head_count, l1_tile=None, compute_dtype=None,
                              out_dtype=None):
    """x1: (N, C1, H1, W1), x2: (N, C2, H2, W2) (NCHW). Returns (N, C2, H1, W1)."""
    n, c1, h1, w1 = x1.shape
    n2, c2, h2, w2 = x2.shape
    assert n == n2
    assert key_channels % head_count == 0
    assert value_channels % head_count == 0
    l1, l2 = h1 * w1, h2 * w2
    if out_dtype is None:
        out_dtype = x2.dtype

    # Flatten spatial onto the lane axis. No physical padding anywhere.
    x1f = x1.reshape(n, c1, l1)
    x2f = x2.reshape(n, c2, l2)

    wq, wk, wv, wr = params["wq"], params["wk"], params["wv"], params["wr"]
    if compute_dtype is not None:
        x1f = x1f.astype(compute_dtype)
        x2f = x2f.astype(compute_dtype)
        wq = wq.astype(compute_dtype)
        wk = wk.astype(compute_dtype)
        wv = wv.astype(compute_dtype)
        wr = wr.astype(compute_dtype)
    # Fuse the two x2 projections into a single matmul; biases stay f32.
    wkv = jnp.concatenate([wk, wv], axis=0)
    bq = params["bq"].reshape(key_channels, 1).astype(jnp.float32)
    bkv = jnp.concatenate([params["bk"], params["bv"]], axis=0) \
             .reshape(key_channels + value_channels, 1).astype(jnp.float32)
    br = params["br"].reshape(c2, 1).astype(jnp.float32)

    head_key = key_channels // head_count
    head_val = value_channels // head_count
    key_head_ids = jnp.arange(key_channels) // head_key
    val_head_ids = jnp.arange(value_channels) // head_val
    cmask = (val_head_ids[:, None] == key_head_ids[None, :]).astype(jnp.float32)

    budget = _vmem_budget_bytes()

    # ---- Pass 1: per-batch (C2, K) folded context ----------------------------
    ctx_kernel = functools.partial(_context_kernel, key_channels=key_channels)
    wrct = pl.pallas_call(
        ctx_kernel,
        out_shape=jax.ShapeDtypeStruct((n, c2, key_channels), jnp.float32),
        grid=(n,),
        in_specs=[
            pl.BlockSpec((1, c2, l2), lambda b: (b, 0, 0)),   # full x2 extent
            pl.BlockSpec(wkv.shape, lambda b: (0, 0)),
            pl.BlockSpec(bkv.shape, lambda b: (0, 0)),
            pl.BlockSpec(wr.shape, lambda b: (0, 0)),
            pl.BlockSpec(cmask.shape, lambda b: (0, 0)),
        ],
        out_specs=pl.BlockSpec((1, c2, key_channels), lambda b: (b, 0, 0)),
        compiler_params=pltpu.CompilerParams(
            dimension_semantics=("parallel",),
            vmem_limit_bytes=budget),
    )(x2f, wkv, bkv, wr, cmask)

    # ---- Pass 2: lane-dense tiling over x1 spatial ---------------------------
    in_bytes = jnp.dtype(x1f.dtype).itemsize
    out_bytes = jnp.dtype(out_dtype).itemsize
    if l1_tile is None:
        # bytes per spatial lane: double-buffered x1/out tiles + f32 intermediates
        per_lane = (2 * (c1 * in_bytes + c2 * out_bytes)
                    + 4 * (key_channels + 2 * c2 + 4))
        l1_tile = (budget // max(per_lane, 1)) // _LANE * _LANE
        l1_tile = max(_LANE, min(l1_tile, 8192))
    l1_tile = min(_round_up(l1_tile, _LANE), _round_up(l1, _LANE))
    num_l1_tiles = pl.cdiv(l1, l1_tile)   # ragged last tile handled by Pallas

    att_kernel = functools.partial(_attend_kernel, head_count=head_count,
                                   head_key_channels=head_key)
    out = pl.pallas_call(
        att_kernel,
        out_shape=jax.ShapeDtypeStruct((n, c2, l1), out_dtype),
        grid=(n, num_l1_tiles),
        in_specs=[
            pl.BlockSpec((1, c1, l1_tile), lambda b, t: (b, 0, t)),
            pl.BlockSpec((1, c2, key_channels), lambda b, t: (b, 0, 0)),
            pl.BlockSpec(wq.shape, lambda b, t: (0, 0)),
            pl.BlockSpec(bq.shape, lambda b, t: (0, 0)),
            pl.BlockSpec(br.shape, lambda b, t: (0, 0)),
        ],
        out_specs=pl.BlockSpec((1, c2, l1_tile), lambda b, t: (b, 0, t)),
        compiler_params=pltpu.CompilerParams(
            dimension_semantics=("parallel", "parallel"),
            vmem_limit_bytes=budget),
    )(x1f, wrct, wq, bq, br)

    return out.reshape(n, c2, h1, w1)


# --------------------------------------------------------------------------
# Pure-JAX reference matching the PyTorch forward exactly.
# --------------------------------------------------------------------------
def reference(x1, x2, params, *, key_channels, value_channels, head_count):
    n, c1, h1, w1 = x1.shape
    _, c2, h2, w2 = x2.shape
    l1, l2 = h1 * w1, h2 * w2
    x1f = x1.reshape(n, c1, l1)
    x2f = x2.reshape(n, c2, l2)

    queries = jnp.einsum("kc,ncl->nkl", params["wq"], x1f) + params["bq"][None, :, None]
    keys = jnp.einsum("kc,ncl->nkl", params["wk"], x2f) + params["bk"][None, :, None]
    values = jnp.einsum("vc,ncl->nvl", params["wv"], x2f) + params["bv"][None, :, None]

    hk = key_channels // head_count
    hv = value_channels // head_count
    attended = []
    for i in range(head_count):
        k = jax.nn.softmax(keys[:, i * hk:(i + 1) * hk, :], axis=2)
        q = jax.nn.softmax(queries[:, i * hk:(i + 1) * hk, :], axis=1)
        v = values[:, i * hv:(i + 1) * hv, :]
        context = jnp.einsum("nkl,nvl->nkv", k, v)
        att = jnp.einsum("nkv,nkl->nvl", context, q)
        attended.append(att)
    agg = jnp.concatenate(attended, axis=1)
    out = jnp.einsum("cv,nvl->ncl", params["wr"], agg) + params["br"][None, :, None]
    return out.reshape(n, c2, h1, w1)


def init_params(key, c1, c2, key_channels, value_channels):
    """Deterministic synthetic parameters (1x1 conv weights flattened to 2D)."""
    ks = jax.random.split(key, 8)
    scale = 0.1
    return {
        "wq": scale * jax.random.normal(ks[0], (key_channels, c1), jnp.float32),
        "bq": scale * jax.random.normal(ks[1], (key_channels,), jnp.float32),
        "wk": scale * jax.random.normal(ks[2], (key_channels, c2), jnp.float32),
        "bk": scale * jax.random.normal(ks[3], (key_channels,), jnp.float32),
        "wv": scale * jax.random.normal(ks[4], (value_channels, c2), jnp.float32),
        "bv": scale * jax.random.normal(ks[5], (value_channels,), jnp.float32),
        "wr": scale * jax.random.normal(ks[6], (c2, value_channels), jnp.float32),
        "br": scale * jax.random.normal(ks[7], (c2,), jnp.float32),
    }


if __name__ == "__main__":
    N = 2
    C1, C2 = 4, 6
    KEY_CH, VAL_CH, HEADS = 8, 8, 2

    root = jax.random.PRNGKey(0)
    k_a1, k_a2, k_b1, k_b2, k_p = jax.random.split(root, 5)
    params = init_params(k_p, C1, C2, KEY_CH, VAL_CH)

    # Case 1: 16x16 / 8x8 spatial; l1_tile=128 exercises the multi-tile grid.
    x1a = jax.random.normal(k_a1, (N, C1, 16, 16), jnp.float32)
    x2a = jax.random.normal(k_a2, (N, C2, 8, 8), jnp.float32)
    out_a = efficient_cross_attention(
        x1a, x2a, params, key_channels=KEY_CH, value_channels=VAL_CH,
        head_count=HEADS, l1_tile=128)
    out_a = jax.block_until_ready(out_a)
    ref_a = reference(x1a, x2a, params, key_channels=KEY_CH,
                      value_channels=VAL_CH, head_count=HEADS)
    assert out_a.shape == (N, C2, 16, 16), out_a.shape
    assert jnp.allclose(out_a, ref_a, atol=2e-3, rtol=2e-3), float(
        jnp.max(jnp.abs(out_a - ref_a)))

    # Case 2: ragged spatial sizes exercise the partial last x1/output tile
    # (masked block writes) and a non-128-multiple x2 spatial extent.
    x1b = jax.random.normal(k_b1, (N, C1, 12, 12), jnp.float32)   # L1=144
    x2b = jax.random.normal(k_b2, (N, C2, 9, 7), jnp.float32)     # L2=63
    out_b = efficient_cross_attention(
        x1b, x2b, params, key_channels=KEY_CH, value_channels=VAL_CH,
        head_count=HEADS, l1_tile=128)
    out_b = jax.block_until_ready(out_b)
    ref_b = reference(x1b, x2b, params, key_channels=KEY_CH,
                      value_channels=VAL_CH, head_count=HEADS)
    assert out_b.shape == (N, C2, 12, 12), out_b.shape
    assert jnp.allclose(out_b, ref_b, atol=2e-3, rtol=2e-3), float(
        jnp.max(jnp.abs(out_b - ref_b)))

    # Case 3: bf16 compute dtype for the streamed tensors (f32 accumulation and
    # f32 softmax math inside the kernels) -> looser tolerance vs the f32 ref.
    out_c = efficient_cross_attention(
        x1a, x2a, params, key_channels=KEY_CH, value_channels=VAL_CH,
        head_count=HEADS, compute_dtype=jnp.bfloat16)
    out_c = jax.block_until_ready(out_c)
    assert out_c.shape == (N, C2, 16, 16), out_c.shape
    assert jnp.allclose(out_c.astype(jnp.float32), ref_a, atol=5e-2, rtol=5e-2), \
        float(jnp.max(jnp.abs(out_c.astype(jnp.float32) - ref_a)))

    print("KERNEL_OK")
</pallas_src>

<mosaic_0001>
module attributes {stable_mosaic.version = 11 : i64} {
  func.func @_context_kernel(%arg0: i32, %arg1: memref<1x6x64xf32, #tpu.memory_space<vmem>>, %arg2: memref<16x6xf32, #tpu.memory_space<vmem>>, %arg3: memref<16x1xf32, #tpu.memory_space<vmem>>, %arg4: memref<6x8xf32, #tpu.memory_space<vmem>>, %arg5: memref<8x8xf32, #tpu.memory_space<vmem>>, %arg6: memref<1x6x8xf32, #tpu.memory_space<vmem>>) attributes {dimension_semantics = [#tpu.dimension_semantics<parallel>], iteration_bounds = array<i64: 2>, scalar_prefetch = 0 : i64, scratch_operands = 0 : i64, tpu.core_type = #tpu.core_type<tc>, window_params = [{transform_indices = @transform_0, window_bounds = array<i64: 1, 6, 64>}, {pipeline_mode = #tpu.pipeline_mode<synchronous>, transform_indices = @transform_1, window_bounds = array<i64: 16, 6>}, {pipeline_mode = #tpu.pipeline_mode<synchronous>, transform_indices = @transform_2, window_bounds = array<i64: 16, 1>}, {pipeline_mode = #tpu.pipeline_mode<synchronous>, transform_indices = @transform_3, window_bounds = array<i64: 6, 8>}, {pipeline_mode = #tpu.pipeline_mode<synchronous>, transform_indices = @transform_4, window_bounds = array<i64: 8, 8>}, {transform_indices = @transform_5, window_bounds = array<i64: 1, 6, 8>}]} {
    %c0 = arith.constant 0 : index
    %c0_0 = arith.constant 0 : index
    %c0_1 = arith.constant 0 : index
    %0 = vector.load %arg1[%c0, %c0_0, %c0_1] : memref<1x6x64xf32, #tpu.memory_space<vmem>>, vector<1x6x64xf32>
    %1 = vector.shape_cast %0 : vector<1x6x64xf32> to vector<6x64xf32>
    %c0_2 = arith.constant 0 : index
    %c0_3 = arith.constant 0 : index
    %2 = vector.load %arg2[%c0_2, %c0_3] : memref<16x6xf32, #tpu.memory_space<vmem>>, vector<16x6xf32>
    %cst = arith.constant dense<0.000000e+00> : vector<16x64xf32>
    %3 = tpu.matmul %2, %1, %cst {dimension_numbers = #tpu.dot_dimension_numbers<[1], [0], [0], [1], [0, 0, 1, 1], [], []>} : vector<16x6xf32>, vector<6x64xf32>, vector<16x64xf32> -> vector<16x64xf32>
    %c0_4 = arith.constant 0 : index
    %c0_5 = arith.constant 0 : index
    %4 = vector.load %arg3[%c0_4, %c0_5] : memref<16x1xf32, #tpu.memory_space<vmem>>, vector<16x1xf32>
    %5 = vector.broadcast %4 : vector<16x1xf32> to vector<16x64xf32>
    %6 = arith.addf %3, %5 : vector<16x64xf32>
    %7 = vector.extract_strided_slice %6 {offsets = [0, 0], sizes = [8, 64], strides = [1, 1]} : vector<16x64xf32> to vector<8x64xf32>
    %8 = vector.extract_strided_slice %6 {offsets = [8, 0], sizes = [8, 64], strides = [1, 1]} : vector<16x64xf32> to vector<8x64xf32>
    %cst_6 = arith.constant dense<0xFF800000> : vector<8xf32>
    %9 = vector.multi_reduction <maximumf>, %7, %cst_6 [1] : vector<8x64xf32> to vector<8xf32>
    %10 = vector.shape_cast %9 : vector<8xf32> to vector<8x1xf32>
    %11 = vector.broadcast %10 : vector<8x1xf32> to vector<8x64xf32>
    %12 = arith.subf %7, %11 : vector<8x64xf32>
    %13 = math.exp %12 : vector<8x64xf32>
    %cst_7 = arith.constant dense<0.000000e+00> : vector<8xf32>
    %14 = vector.multi_reduction <add>, %13, %cst_7 [1] : vector<8x64xf32> to vector<8xf32>
    %15 = vector.shape_cast %14 : vector<8xf32> to vector<8x1xf32>
    %16 = tpu.reciprocal %15 : vector<8x1xf32> -> vector<8x1xf32>
    %17 = vector.broadcast %16 : vector<8x1xf32> to vector<8x64xf32>
    %18 = arith.mulf %13, %17 : vector<8x64xf32>
    %cst_8 = arith.constant dense<0.000000e+00> : vector<8x8xf32>
    %19 = tpu.matmul %8, %18, %cst_8 {dimension_numbers = #tpu.dot_dimension_numbers<[1], [1], [0], [0], [0, 0, 1, 0], [], []>} : vector<8x64xf32>, vector<8x64xf32>, vector<8x8xf32> -> vector<8x8xf32>
    %c0_9 = arith.constant 0 : index
    %c0_10 = arith.constant 0 : index
    %20 = vector.load %arg4[%c0_9, %c0_10] : memref<6x8xf32, #tpu.memory_space<vmem>>, vector<6x8xf32>
    %c0_11 = arith.constant 0 : index
    %c0_12 = arith.constant 0 : index
    %21 = vector.load %arg5[%c0_11, %c0_12] : memref<8x8xf32, #tpu.memory_space<vmem>>, vector<8x8xf32>
    %22 = arith.mulf %19, %21 : vector<8x8xf32>
    %cst_13 = arith.constant dense<0.000000e+00> : vector<6x8xf32>
    %23 = tpu.matmul %20, %22, %cst_13 {dimension_numbers = #tpu.dot_dimension_numbers<[1], [0], [0], [1], [0, 0, 1, 1], [], []>} : vector<6x8xf32>, vector<8x8xf32>, vector<6x8xf32> -> vector<6x8xf32>
    %c0_14 = arith.constant 0 : index
    %c0_15 = arith.constant 0 : index
    %c0_16 = arith.constant 0 : index
    %24 = vector.load %arg6[%c0_14, %c0_15, %c0_16] : memref<1x6x8xf32, #tpu.memory_space<vmem>>, vector<1x6x8xf32>
    %25 = vector.shape_cast %24 : vector<1x6x8xf32> to vector<6x8xf32>
    %26 = vector.shape_cast %23 : vector<6x8xf32> to vector<1x6x8xf32>
    tpu.vector_store %arg6[%c0_14, %c0_15, %c0_16], %26 {strides = array<i32>} : memref<1x6x8xf32, #tpu.memory_space<vmem>>, vector<1x6x8xf32>,
    return
  }
  func.func @transform_0(%arg0: i32) -> (i32, i32, i32) {
    %c0_i32 = arith.constant 0 : i32
    %c0_i32_0 = arith.constant 0 : i32
    %c0_i32_1 = arith.constant 0 : i32
    return %arg0, %c0_i32, %c0_i32_0 : i32, i32, i32
  }
  func.func @transform_1(%arg0: i32) -> (i32, i32) {
    %c0_i32 = arith.constant 0 : i32
    %c0_i32_0 = arith.constant 0 : i32
    %c0_i32_1 = arith.constant 0 : i32
    return %c0_i32, %c0_i32_0 : i32, i32
  }
  func.func @transform_2(%arg0: i32) -> (i32, i32) {
    %c0_i32 = arith.constant 0 : i32
    %c0_i32_0 = arith.constant 0 : i32
    %c0_i32_1 = arith.constant 0 : i32
    return %c0_i32, %c0_i32_0 : i32, i32
  }
  func.func @transform_3(%arg0: i32) -> (i32, i32) {
    %c0_i32 = arith.constant 0 : i32
    %c0_i32_0 = arith.constant 0 : i32
    %c0_i32_1 = arith.constant 0 : i32
    return %c0_i32, %c0_i32_0 : i32, i32
  }
  func.func @transform_4(%arg0: i32) -> (i32, i32) {
    %c0_i32 = arith.constant 0 : i32
    %c0_i32_0 = arith.constant 0 : i32
    %c0_i32_1 = arith.constant 0 : i32
    return %c0_i32, %c0_i32_0 : i32, i32
  }
  func.func @transform_5(%arg0: i32) -> (i32, i32, i32) {
    %c0_i32 = arith.constant 0 : i32
    %c0_i32_0 = arith.constant 0 : i32
    %c0_i32_1 = arith.constant 0 : i32
    return %arg0, %c0_i32, %c0_i32_0 : i32, i32, i32
  }
}

</mosaic_0001>

<bundles_post_ra>
// kernel: tpu_custom_call.1
= control target key start
LH: loop header
LB: loop body
LE: loop exit
PB: predicated region body
PF: predicated region fallthrough
CT: control target
= control target key end

     0   :  { %s472_s18 = smov 0   ;;  %s518_s0 = inlined_call_operand.vmem [shape: f32[2,6,64], index: 0, kind: input, shape index: {}]   ;;  %s519_s1 = inlined_call_operand.vmem [shape: f32[16,6], index: 1, kind: input, shape index: {}]   ;;  %s520_s2 = inlined_call_operand.vmem [shape: f32[16,1], index: 2, kind: input, shape index: {}]   ;;  %s521_s3 = inlined_call_operand.vmem [shape: f32[6,8], index: 3, kind: input, shape index: {}]   ;;  %s522_s4 = inlined_call_operand.vmem [shape: f32[8,8], index: 4, kind: input, shape index: {}]   ;;  %s523_s5 = inlined_call_operand.vmem [shape: f32[2,6,8], index: 5, kind: output, shape index: {}]  }
   0x1 LB: > { %s402_s19 = sadd.s32 4294967295, %s439_s18   ;;  %p406_p0 = scmp.ge.s32.totalorder %s439_s18, 1  ;;  %s439_s18 = sphi %s472_s18, %s15_s18  }
   0x2   : > { %p186_p1 = scmp.lt.s32.totalorder %s439_s18, 3 }
   0x4   : > { %p187_p2 = pnand %p406_p0, %p186_p1 }
   0x5   : > { %p212_p3 = scmp.lt.s32.totalorder (!%p187_p2), %s402_s19, 1 }
   0x6   : > { %190 = sbr.rel (%p187_p2) target bundleno = 677 (0x2a5), region = 40 }
   0xb   : > { %v223_v0 = vld [vmem:[%s520_s2] sm:$0xff]  ;;  %v441_v1 = vmov 0   ;;  %s525_s19 = smov (!%p212_p3, %s402_s19), 1  ;;  %vm242_vm0 = vcmask 1045504   ;;  %vm235_vm1 = vcmask 48128   ;;  %vm269_vm2 = vcmask 523264  }
   0xc   : > { %427 = vset.pattern.permute.xlu0 %v441_v1  ;;  %428 = vset.pattern.permute.xlu1 %v441_v1  ;;  %s407_s22 = sshll.u32 %s525_s19, 3  ;;  %v221_v2 = vld [vmem:[%s519_s1] sm:$0xff]  ;;  %v222_v8 = vld [vmem:[%s519_s1 + $0x8] sm:$0xff]  ;;  %vm323_vm7 = vcmask 64512   ;;  %vm347_vm8 = vcmask 62464  }
   0xd   : > { %227 = vperm.xlu0 %427, %v223_v0   ;;  %s215_s25 = scalar_lea.vmem %s518_s0, %s407_s22  ;;  %v224_v14 = vld [vmem:[%s520_s2 + $0x8] sm:$0xff]  ;;  %v321_v30 = vld [vmem:[%s522_s4] sm:$0xff]  ;;  %s219_s13 = scalar_lea.vmem %s523_s5, %s407_s22 }
   0xe   : > { %v220_v3 = vld [vmem:[%s215_s25] sm:$0x3f] }
   0xf   : > { %409 = vmatpush.msk.msra.mxu0 %vm242_vm0, %v220_v3  ;;  %417 = vmatpush.msk.msra.mxu3 %vm242_vm0, %v220_v3  ;;  %v320_v33 = vld [vmem:[%s521_s3] sm:$0x3f] }
  0x10   : > { %410 = vmatmul.msk.f32.vlgmr.msra.gmra.mxu0 %vm235_vm1, %v221_v2  ;;  %411 = vmatmul.msk.f32.vlgmr.msra.gmra.mxu3 %vm235_vm1, %v222_v8 }
  0x7f   : > { %v228_v4 = vpop.permute.xlu0 %227 }
  0x8d   : > { %v263_v5 = vpop.f32.mrf.mxu0 }
  0x8e   : > { %v264_v6 = vadd.f32 %v263_v5, %v228_v4 }
  0x90   : > { %v270_v7 = vsel %vm269_vm2, %v264_v6, -inf }
  0x91   : > { %271 = vmax.xlane.f32.xlu0 %v270_v7 }
  0x93   : > { %v266_v27 = vpop.f32.mrf.mxu3 }
 0x104   : > { %v272_v9 = vpop.xlane.xlu0 %271 }
 0x105   : > { %v273_v10 = vsub.f32 %v264_v6, %v272_v9 }
 0x107   : > { %v274_v11 = vmul.f32 1.442695, %v273_v10 }
 0x109   : > { %429 = vpow2.f32 %v274_v11 }
 0x10f   : > { %v430_v12 = vpop.eup %429 }
 0x110   : > { %v276_v13 = vsel %vm269_vm2, %v430_v12, 0.0 }
 0x111   : > { %277 = vadd.xlane.f32.xlu1 %v276_v13 }
 0x12a   : > { %232 = vperm.xlu1 %428, %v224_v14  }
 0x184   : > { %v278_v15 = vpop.xlane.xlu1 %277 }
 0x185   : > { %431 = vrcp.f32 %v278_v15  ;;  %v290_v19 = vand.u32 2147483648, %v278_v15  ;;  %v288_v21 = vand.u32 2147483647, %v278_v15  ;;  %vm284_vm4 = vweird.f32 %v278_v15 }
 0x187   : > { %v291_v23 = vor.u32 1.1754944e-38, %v290_v19  ;;  %vm289_vm6 = vcmp.eq.f32.partialorder %v288_v21, 8.507059e+37 }
 0x18b   : > { %v432_v16 = vpop.eup %431 }
 0x18c   : > { %v280_v17 = vmul.f32 %v432_v16, %v278_v15  ;;  %vm285_vm3 = vweird.f32 %v432_v16 }
 0x18d   : > { %vm286_vm5 = vmor %vm284_vm4, %vm285_vm3 }
 0x18e   : > { %v281_v18 = vsub.f32 1.0, %v280_v17 }
 0x190   : > { %v282_v20 = vmul.f32 %v432_v16, %v281_v18 }
 0x192   : > { %v283_v22 = vadd.f32 %v432_v16, %v282_v20 }
 0x194   : > { %v287_v24 = vsel %vm286_vm5, %v432_v16, %v283_v22 }
 0x195   : > { %v292_v25 = vsel %vm289_vm6, %v291_v23, %v287_v24 }
 0x196   : > { %v293_v26 = vmul.f32 %v430_v12, %v292_v25 }
 0x198   : > { %412 = vmatpush.xpose.msk.msra.mxu1 %vm269_vm2, %v293_v26 }
 0x19c   : > { %v233_v28 = vpop.permute.xlu1 %232 }
 0x19d   : > { %v267_v29 = vadd.f32 %v266_v27, %v233_v28 }
 0x19f   : > { %413 = vmatmul.msk.f32.vlgmr.msra.gmra.mxu1 %vm269_vm2, %v267_v29 }
 0x21c   : > { %v317_v31 = vpop.f32.mrf.mxu1 }
 0x21d   : > { %v322_v32 = vmul.f32 %v321_v30, %v317_v31 }
 0x21f   : > { %342 = vmatpush.msra.mxu2 %v322_v32 }
 0x220   : > { %414 = vmatmul.msk.f32.vlgmr.msra.gmra.mxu2 %vm323_vm7, %v320_v33 }
 0x2a3   : > { %v344_v34 = vpop.f32.mrf.mxu2 }
 0x2a4   : > { %348 = vst.msk [vmem:[%s219_s13] sm:$0x3f] %vm347_vm8, %v344_v34 }
 0x2a5 PF: > { %s15_s18 = sadd.s32 1, %s439_s18  }
 0x2a6   : > { %p12_p4 = scmp.ge.s32.totalorder %s15_s18, 4  }
 0x2a8   :  { %14 = sbr.rel (!%p12_p4) target bundleno = 1 (0x1), region = 70 }

</bundles_post_ra>
